<compile_context>
chip_gen: v6e
topology: v6e:2x2x1
jax: 0.10.0
libtpu: 0.0.40
codegen_flags: <defaults>
</compile_context>

<pallas_src>
import functools

import jax
import jax.numpy as jnp
from jax import lax
from jax.experimental import pallas as pl
from jax.experimental.pallas import tpu as pltpu

# Contract the last dim of both operands: (tm, tk) x (tn, tk) -> (tm, tn).
_RHS_T_DIMS = (((1,), (1,)), ((), ()))


# ----------------------------------------------------------------------------
# Kernels
# ----------------------------------------------------------------------------
def exp_kernel(logw_ref, wpos_ref):
    # Mem-bound positive-weight pass: exp in f32, store in compute dtype.
    wpos_ref[...] = jnp.exp(logw_ref[...].astype(jnp.float32)).astype(wpos_ref.dtype)


def matmul_kernel(x_ref, w_ref, o_ref, acc_ref):
    # x_ref: (tm, tk), w_ref: (tn, tk) [natural layout], acc_ref: (tm, tn) f32
    @pl.when(pl.program_id(2) == 0)
    def _init():
        acc_ref[...] = jnp.zeros_like(acc_ref)

    acc_ref[...] += lax.dot_general(
        x_ref[...], w_ref[...], _RHS_T_DIMS, preferred_element_type=jnp.float32
    )

    @pl.when(pl.program_id(2) == pl.num_programs(2) - 1)
    def _store():
        o_ref[...] = acc_ref[...].astype(o_ref.dtype)


def fused_exp_matmul_kernel(x_ref, logw_ref, o_ref, acc_ref):
    # Used only when there is a single batch tile, so each weight tile is
    # exponentiated exactly once (no recompute penalty, no W_pos HBM traffic).
    @pl.when(pl.program_id(2) == 0)
    def _init():
        acc_ref[...] = jnp.zeros_like(acc_ref)

    w_pos = jnp.exp(logw_ref[...].astype(jnp.float32)).astype(x_ref.dtype)
    acc_ref[...] += lax.dot_general(
        x_ref[...], w_pos, _RHS_T_DIMS, preferred_element_type=jnp.float32
    )

    @pl.when(pl.program_id(2) == pl.num_programs(2) - 1)
    def _store():
        o_ref[...] = acc_ref[...].astype(o_ref.dtype)


# ----------------------------------------------------------------------------
# Wrapper
# ----------------------------------------------------------------------------
def _round_up(x: int, m: int) -> int:
    return ((x + m - 1) // m) * m


def positive_linear(x: jax.Array, log_weights: jax.Array, *, compute_dtype=None):
    """y = x @ exp(log_weights).T  (PyTorch PositiveLinear.forward).

    x:           (batch, input_dimension)
    log_weights: (output_dimension, input_dimension)
    """
    M, K = x.shape
    N, K_w = log_weights.shape
    assert K == K_w, (K, K_w)
    compute_dtype = jnp.dtype(compute_dtype or x.dtype)
    out_dtype = x.dtype

    # MXU-friendly tile sizes, capped to the (aligned) problem size.
    tm = min(256, _round_up(M, 8))
    tn = min(256, _round_up(N, 128))
    tk = min(512, _round_up(K, 128))

    Mp = _round_up(M, tm)
    Np = _round_up(N, tn)
    Kp = _round_up(K, tk)

    # Zero-pad to tile multiples (lane-dense blocks; padding cannot leak into
    # the reduction because padded x columns are zero).
    xp = x.astype(compute_dtype)
    if (Mp, Kp) != (M, K):
        xp = jnp.pad(xp, ((0, Mp - M), (0, Kp - K)))
    lw = log_weights
    if (Np, Kp) != (N, K):
        lw = jnp.pad(lw, ((0, Np - N), (0, Kp - K)))

    grid = (Mp // tm, Np // tn, Kp // tk)
    item = compute_dtype.itemsize
    logw_item = jnp.dtype(log_weights.dtype).itemsize
    out_item = jnp.dtype(out_dtype).itemsize

    fuse_exp = grid[0] == 1  # single batch tile -> exp each weight tile once

    if fuse_exp:
        kernel = fused_exp_matmul_kernel
        w_arg = lw
        w_item = logw_item
        mm_transcendentals = Np * Kp
    else:
        # Pass 1: positive weights computed once, amortised over all batch tiles.
        w_arg = pl.pallas_call(
            exp_kernel,
            out_shape=jax.ShapeDtypeStruct((Np, Kp), compute_dtype),
            grid=(Np // tn, Kp // tk),
            in_specs=[pl.BlockSpec((tn, tk), lambda j, k: (j, k))],
            out_specs=pl.BlockSpec((tn, tk), lambda j, k: (j, k)),
            compiler_params=pltpu.CompilerParams(
                dimension_semantics=("parallel", "parallel")
            ),
            cost_estimate=pl.CostEstimate(
                flops=0,
                transcendentals=Np * Kp,
                bytes_accessed=Np * Kp * (logw_item + item),
            ),
        )(lw)
        kernel = matmul_kernel
        w_item = item
        mm_transcendentals = 0

    # Pass 2 (or single fused pass): tiled, pipelined matmul, f32 accumulator.
    out_p = pl.pallas_call(
        kernel,
        out_shape=jax.ShapeDtypeStruct((Mp, Np), out_dtype),
        grid=grid,
        in_specs=[
            pl.BlockSpec((tm, tk), lambda i, j, k: (i, k)),
            pl.BlockSpec((tn, tk), lambda i, j, k: (j, k)),
        ],
        out_specs=pl.BlockSpec((tm, tn), lambda i, j, k: (i, j)),
        scratch_shapes=[pltpu.VMEM((tm, tn), jnp.float32)],
        compiler_params=pltpu.CompilerParams(
            dimension_semantics=("parallel", "parallel", "arbitrary")
        ),
        cost_estimate=pl.CostEstimate(
            flops=2 * Mp * Np * Kp,
            transcendentals=mm_transcendentals,
            bytes_accessed=Mp * Kp * item + Np * Kp * w_item + Mp * Np * out_item,
        ),
    )(xp, w_arg)

    if (Mp, Np) != (M, N):
        out_p = out_p[:M, :N]
    return out_p


def init_log_weights(key, output_dimension: int, input_dimension: int) -> jax.Array:
    # Matches torch.nn.init.xavier_uniform_ on a (out_dim, in_dim) matrix.
    init = jax.nn.initializers.glorot_uniform(in_axis=1, out_axis=0)
    return init(key, (output_dimension, input_dimension), jnp.float32)


# ----------------------------------------------------------------------------
# Self-test
# ----------------------------------------------------------------------------
if __name__ == "__main__":
    key = jax.random.PRNGKey(0)
    kx, kw, kx2 = jax.random.split(key, 3)

    input_dimension = 96
    output_dimension = 80
    log_weights = init_log_weights(kw, output_dimension, input_dimension)
    w_pos_ref = jnp.exp(log_weights)

    fwd = jax.jit(functools.partial(positive_linear))

    # Fused path: single batch tile, non-(8,128)-aligned shapes.
    batch = 24
    x = jax.random.normal(kx, (batch, input_dimension), dtype=jnp.float32)
    y = jax.block_until_ready(fwd(x, log_weights))
    y_ref = x @ w_pos_ref.T
    assert y.shape == (batch, output_dimension), y.shape
    assert jnp.allclose(y, y_ref, atol=1e-4, rtol=1e-5), float(
        jnp.max(jnp.abs(y - y_ref))
    )

    # Two-pass path: multiple batch tiles -> separate exp pass is exercised.
    batch2 = 520
    x2 = jax.random.normal(kx2, (batch2, input_dimension), dtype=jnp.float32)
    y2 = jax.block_until_ready(fwd(x2, log_weights))
    y2_ref = x2 @ w_pos_ref.T
    assert y2.shape == (batch2, output_dimension), y2.shape
    assert jnp.allclose(y2, y2_ref, atol=1e-4, rtol=1e-5), float(
        jnp.max(jnp.abs(y2 - y2_ref))
    )

    print("KERNEL_OK")
</pallas_src>

<mosaic_0001>
module attributes {stable_mosaic.version = 11 : i64} {
  func.func @fused_exp_matmul_kernel(%arg0: i32, %arg1: i32, %arg2: i32, %arg3: memref<24x128xf32, #tpu.memory_space<vmem>>, %arg4: memref<128x128xf32, #tpu.memory_space<vmem>>, %arg5: memref<24x128xf32, #tpu.memory_space<vmem>>, %arg6: memref<24x128xf32, #tpu.memory_space<vmem>>) attributes {dimension_semantics = [#tpu.dimension_semantics<parallel>, #tpu.dimension_semantics<parallel>, #tpu.dimension_semantics<arbitrary>], iteration_bounds = array<i64: 1, 1, 1>, scalar_prefetch = 0 : i64, scratch_operands = 1 : i64, tpu.core_type = #tpu.core_type<tc>, window_params = [{transform_indices = @transform_0, window_bounds = array<i64: 24, 128>}, {transform_indices = @transform_1, window_bounds = array<i64: 128, 128>}, {transform_indices = @transform_2, window_bounds = array<i64: 24, 128>}]} {
    %c0_i32 = arith.constant 0 : i32
    %0 = arith.cmpi eq, %arg2, %c0_i32 : i32
    %1 = arith.extui %0 : i1 to i32
    %c0_i32_0 = arith.constant 0 : i32
    %2 = arith.cmpi ne, %1, %c0_i32_0 : i32
    scf.if %2 {
      %cst_10 = arith.constant 0.000000e+00 : f32
      %13 = vector.broadcast %cst_10 : f32 to vector<24x128xf32>
      %c0_11 = arith.constant 0 : index
      %c0_12 = arith.constant 0 : index
      %14 = vector.load %arg6[%c0_11, %c0_12] : memref<24x128xf32, #tpu.memory_space<vmem>>, vector<24x128xf32>
      tpu.vector_store %arg6[%c0_11, %c0_12], %13 {strides = array<i32>} : memref<24x128xf32, #tpu.memory_space<vmem>>, vector<24x128xf32>,
    } else {
    }
    %c0 = arith.constant 0 : index
    %c0_1 = arith.constant 0 : index
    %3 = vector.load %arg4[%c0, %c0_1] : memref<128x128xf32, #tpu.memory_space<vmem>>, vector<128x128xf32>
    %4 = math.exp %3 : vector<128x128xf32>
    %c0_2 = arith.constant 0 : index
    %c0_3 = arith.constant 0 : index
    %5 = vector.load %arg6[%c0_2, %c0_3] : memref<24x128xf32, #tpu.memory_space<vmem>>, vector<24x128xf32>
    %c0_4 = arith.constant 0 : index
    %c0_5 = arith.constant 0 : index
    %6 = vector.load %arg3[%c0_4, %c0_5] : memref<24x128xf32, #tpu.memory_space<vmem>>, vector<24x128xf32>
    %cst = arith.constant dense<0.000000e+00> : vector<24x128xf32>
    %7 = tpu.matmul %6, %4, %cst {dimension_numbers = #tpu.dot_dimension_numbers<[1], [1], [0], [0], [0, 0, 1, 0], [], []>} : vector<24x128xf32>, vector<128x128xf32>, vector<24x128xf32> -> vector<24x128xf32>
    %8 = arith.addf %5, %7 : vector<24x128xf32>
    %c0_6 = arith.constant 0 : index
    %c0_7 = arith.constant 0 : index
    %9 = vector.load %arg6[%c0_6, %c0_7] : memref<24x128xf32, #tpu.memory_space<vmem>>, vector<24x128xf32>
    tpu.vector_store %arg6[%c0_6, %c0_7], %8 {strides = array<i32>} : memref<24x128xf32, #tpu.memory_space<vmem>>, vector<24x128xf32>,
    %c0_i32_8 = arith.constant 0 : i32
    %10 = arith.cmpi eq, %arg2, %c0_i32_8 : i32
    %11 = arith.extui %10 : i1 to i32
    %c0_i32_9 = arith.constant 0 : i32
    %12 = arith.cmpi ne, %11, %c0_i32_9 : i32
    scf.if %12 {
      %c0_10 = arith.constant 0 : index
      %c0_11 = arith.constant 0 : index
      %13 = vector.load %arg6[%c0_10, %c0_11] : memref<24x128xf32, #tpu.memory_space<vmem>>, vector<24x128xf32>
      %c0_12 = arith.constant 0 : index
      %c0_13 = arith.constant 0 : index
      %14 = vector.load %arg5[%c0_12, %c0_13] : memref<24x128xf32, #tpu.memory_space<vmem>>, vector<24x128xf32>
      tpu.vector_store %arg5[%c0_12, %c0_13], %13 {strides = array<i32>} : memref<24x128xf32, #tpu.memory_space<vmem>>, vector<24x128xf32>,
    } else {
    }
    return
  }
  func.func @transform_0(%arg0: i32, %arg1: i32, %arg2: i32) -> (i32, i32) {
    %c0_i32 = arith.constant 0 : i32
    return %arg0, %arg2 : i32, i32
  }
  func.func @transform_1(%arg0: i32, %arg1: i32, %arg2: i32) -> (i32, i32) {
    %c0_i32 = arith.constant 0 : i32
    return %arg1, %arg2 : i32, i32
  }
  func.func @transform_2(%arg0: i32, %arg1: i32, %arg2: i32) -> (i32, i32) {
    %c0_i32 = arith.constant 0 : i32
    return %arg0, %arg1 : i32, i32
  }
}

</mosaic_0001>

<bundles_post_ra>
// kernel: positive_linear.1
= control target key start
LH: loop header
LB: loop body
LE: loop exit
PB: predicated region body
PF: predicated region fallthrough
CT: control target
= control target key end

     0   :  { %v335_v2 = vmov 0.0   ;;  %vm336_vm0 = vmmov 0   ;;  %s453_s0 = inlined_call_operand.vmem [shape: f32[24,128], index: 0, kind: input, shape index: {}]   ;;  %s454_s1 = inlined_call_operand.vmem [shape: f32[128,128], index: 1, kind: input, shape index: {}]   ;;  %s455_s2 = inlined_call_operand.hbm [shape: f32[24,128], index: 2, kind: output, shape index: {}]  }
   0x1   :  { %v34_v0 = vld [vmem:[%s454_s1 + $0x78] sm:$0xff]  ;;  %v33_v1 = vld [vmem:[%s454_s1 + $0x70] sm:$0xff]  ;;  %244 = vmatprep.subr.mxu1 %v335_v2  ;;  %203 = vmatprep.subr.mxu0 %v335_v2  ;;  %v32_v5 = vld [vmem:[%s454_s1 + $0x68] sm:$0xff] }
   0x2   :  { %v65_v3 = vmul.f32 1.442695, %v34_v0  ;;  %v63_v4 = vmul.f32 1.442695, %v33_v1  ;;  %238 = vmatprep.mubr.msk.f32.mxu1 %vm336_vm0, %v335_v2  ;;  %235 = vmatprep.mubr.msk.f32.mxu0 %vm336_vm0, %v335_v2  ;;  %v61_v6 = vmul.f32 1.442695, %v32_v5 }
   0x3   :  { %v31_v7 = vld [vmem:[%s454_s1 + $0x60] sm:$0xff]  ;;  %v30_v9 = vld [vmem:[%s454_s1 + $0x58] sm:$0xff] }
   0x4   :  { %281 = vpow2.f32 %v65_v3  ;;  %v59_v8 = vmul.f32 1.442695, %v31_v7 }
   0x5   :  { %283 = vpow2.f32 %v63_v4 }
   0x6   :  { %285 = vpow2.f32 %v61_v6 }
   0x7   :  { %7 = vsyncpa [#allocation4], 0  ;;  %287 = vpow2.f32 %v59_v8  ;;  %v57_v10 = vmul.f32 1.442695, %v30_v9  ;;  %v29_v11 = vld [vmem:[%s454_s1 + $0x50] sm:$0xff]  ;;  %v28_v15 = vld [vmem:[%s454_s1 + $0x48] sm:$0xff] }
   0x8   :  { %v55_v13 = vmul.f32 1.442695, %v29_v11  ;;  %v53_v16 = vmul.f32 1.442695, %v28_v15  ;;  %v27_v18 = vld [vmem:[%s454_s1 + $0x40] sm:$0xff]  ;;  %v26_v21 = vld [vmem:[%s454_s1 + $0x38] sm:$0xff] }
   0x9   :  { %289 = vpow2.f32 %v57_v10  ;;  %v51_v19 = vmul.f32 1.442695, %v27_v18  ;;  %v49_v22 = vmul.f32 1.442695, %v26_v21  ;;  %v25_v24 = vld [vmem:[%s454_s1 + $0x30] sm:$0xff]  ;;  %v24_v27 = vld [vmem:[%s454_s1 + $0x28] sm:$0xff] }
   0xa   :  { %291 = vpow2.f32 %v55_v13  ;;  %v47_v25 = vmul.f32 1.442695, %v25_v24  ;;  %v45_v28 = vmul.f32 1.442695, %v24_v27  ;;  %v23_v30 = vld [vmem:[%s454_s1 + $0x20] sm:$0xff]  ;;  %v22_v33 = vld [vmem:[%s454_s1 + $0x18] sm:$0xff] }
   0xb   :  { %293 = vpow2.f32 %v53_v16  ;;  %v43_v31 = vmul.f32 1.442695, %v23_v30  ;;  %v41_v34 = vmul.f32 1.442695, %v22_v33  ;;  %v21_v36 = vld [vmem:[%s454_s1 + $0x10] sm:$0xff]  ;;  %v20_v39 = vld [vmem:[%s454_s1 + $0x8] sm:$0xff] }
   0xc   :  { %295 = vpow2.f32 %v51_v19  ;;  %v39_v37 = vmul.f32 1.442695, %v21_v36  ;;  %v37_v40 = vmul.f32 1.442695, %v20_v39  ;;  %v19_v42 = vld [vmem:[%s454_s1] sm:$0xff]  ;;  %v71_v49 = vld [vmem:[%s453_s0 + $0x8] sm:$0xff] }
   0xd   :  { %297 = vpow2.f32 %v49_v22  ;;  %v35_v43 = vmul.f32 1.442695, %v19_v42  ;;  %v70_v50 = vld [vmem:[%s453_s0] sm:$0xff]  ;;  %v72_v51 = vld [vmem:[%s453_s0 + $0x10] sm:$0xff]  ;;  %s337_s18 = smov [#allocation3]  }
   0xe   :  { %299 = vpow2.f32 %v47_v25  ;;  %s173_s19 = sshll.u32 %s337_s18, 4  ;;  %s174_s19 = int_to_ptr.vmem [resolvable:$true] %s173_s19 }
   0xf   :  { %301 = vpow2.f32 %v45_v28  ;;  %s313_s20 = scalar_lea.vmem %s174_s19, 384  ;;  %p318_p1 = scmp.lt.s32.totalorder %s174_s19, %s174_s19 }
  0x10   :  { %303 = vpow2.f32 %v43_v31  ;;  %p314_p0 = scmp.ne.s32.totalorder %s174_s19, %s313_s20  ;;  %p319_p2 = scmp.lt.s32.totalorder %s313_s20, %s313_s20 }
  0x11   :  { %v282_v12 = vpop.eup %281  ;;  %305 = vpow2.f32 %v41_v34 }
  0x12   :  { %260 = vmatpush3.xpose.msra.mxu1 %v282_v12  ;;  %204 = vmatpush3.xpose.msra.mxu0 %v282_v12  ;;  %v284_v14 = vpop.eup %283  ;;  %307 = vpow2.f32 %v39_v37  ;;  %p320_p3 = por %p319_p2, %p318_p1 }
  0x13   :  { %245 = vmatprep.subr.mxu1 %v335_v2  ;;  %205 = vmatprep.subr.mxu0 %v335_v2  ;;  %v286_v17 = vpop.eup %285  ;;  %309 = vpow2.f32 %v37_v40 }
  0x14   :  { %v288_v20 = vpop.eup %287  ;;  %311 = vpow2.f32 %v35_v43  ;;  %p321_p4 = pnand %p320_p3, %p314_p0 }
  0x16   :  { %261 = vmatpush3.xpose.msra.mxu1 %v284_v14  ;;  %206 = vmatpush3.xpose.msra.mxu0 %v284_v14  ;;  %v290_v23 = vpop.eup %289 }
  0x17   :  { %246 = vmatprep.subr.mxu1 %v335_v2  ;;  %207 = vmatprep.subr.mxu0 %v335_v2  ;;  %v292_v26 = vpop.eup %291 }
  0x18   :  { %v294_v29 = vpop.eup %293 }
  0x19   :  { %v296_v32 = vpop.eup %295 }
  0x1a   :  { %262 = vmatpush3.xpose.msra.mxu1 %v286_v17  ;;  %208 = vmatpush3.xpose.msra.mxu0 %v286_v17  ;;  %v298_v35 = vpop.eup %297 }
  0x1b   :  { %247 = vmatprep.subr.mxu1 %v335_v2  ;;  %209 = vmatprep.subr.mxu0 %v335_v2  ;;  %v300_v38 = vpop.eup %299 }
  0x1c   :  { %v302_v41 = vpop.eup %301 }
  0x1d   :  { %v304_v44 = vpop.eup %303 }
  0x1e   :  { %263 = vmatpush3.xpose.msra.mxu1 %v288_v20  ;;  %210 = vmatpush3.xpose.msra.mxu0 %v288_v20  ;;  %v306_v45 = vpop.eup %305 }
  0x1f   :  { %248 = vmatprep.subr.mxu1 %v335_v2  ;;  %211 = vmatprep.subr.mxu0 %v335_v2  ;;  %v308_v46 = vpop.eup %307 }
  0x20   :  { %v310_v47 = vpop.eup %309 }
  0x21   :  { %v312_v48 = vpop.eup %311 }
  0x22   :  { %264 = vmatpush3.xpose.msra.mxu1 %v290_v23  ;;  %212 = vmatpush3.xpose.msra.mxu0 %v290_v23 }
  0x23   :  { %249 = vmatprep.subr.mxu1 %v335_v2  ;;  %213 = vmatprep.subr.mxu0 %v335_v2 }
  0x26   :  { %265 = vmatpush3.xpose.msra.mxu1 %v292_v26  ;;  %214 = vmatpush3.xpose.msra.mxu0 %v292_v26 }
  0x27   :  { %250 = vmatprep.subr.mxu1 %v335_v2  ;;  %215 = vmatprep.subr.mxu0 %v335_v2 }
  0x2a   :  { %266 = vmatpush3.xpose.msra.mxu1 %v294_v29  ;;  %216 = vmatpush3.xpose.msra.mxu0 %v294_v29 }
  0x2b   :  { %251 = vmatprep.subr.mxu1 %v335_v2  ;;  %217 = vmatprep.subr.mxu0 %v335_v2 }
  0x2e   :  { %267 = vmatpush3.xpose.msra.mxu1 %v296_v32  ;;  %218 = vmatpush3.xpose.msra.mxu0 %v296_v32 }
  0x2f   :  { %252 = vmatprep.subr.mxu1 %v335_v2  ;;  %219 = vmatprep.subr.mxu0 %v335_v2 }
  0x32   :  { %268 = vmatpush3.xpose.msra.mxu1 %v298_v35  ;;  %220 = vmatpush3.xpose.msra.mxu0 %v298_v35 }
  0x33   :  { %253 = vmatprep.subr.mxu1 %v335_v2  ;;  %221 = vmatprep.subr.mxu0 %v335_v2 }
  0x36   :  { %269 = vmatpush3.xpose.msra.mxu1 %v300_v38  ;;  %222 = vmatpush3.xpose.msra.mxu0 %v300_v38 }
  0x37   :  { %254 = vmatprep.subr.mxu1 %v335_v2  ;;  %223 = vmatprep.subr.mxu0 %v335_v2 }
  0x3a   :  { %270 = vmatpush3.xpose.msra.mxu1 %v302_v41  ;;  %224 = vmatpush3.xpose.msra.mxu0 %v302_v41 }
  0x3b   :  { %255 = vmatprep.subr.mxu1 %v335_v2  ;;  %225 = vmatprep.subr.mxu0 %v335_v2 }
  0x3e   :  { %271 = vmatpush3.xpose.msra.mxu1 %v304_v44  ;;  %226 = vmatpush3.xpose.msra.mxu0 %v304_v44 }
  0x3f   :  { %256 = vmatprep.subr.mxu1 %v335_v2  ;;  %227 = vmatprep.subr.mxu0 %v335_v2 }
  0x42   :  { %272 = vmatpush3.xpose.msra.mxu1 %v306_v45  ;;  %228 = vmatpush3.xpose.msra.mxu0 %v306_v45 }
  0x43   :  { %257 = vmatprep.subr.mxu1 %v335_v2  ;;  %229 = vmatprep.subr.mxu0 %v335_v2 }
  0x46   :  { %273 = vmatpush3.xpose.msra.mxu1 %v308_v46  ;;  %230 = vmatpush3.xpose.msra.mxu0 %v308_v46 }
  0x47   :  { %258 = vmatprep.subr.mxu1 %v335_v2  ;;  %231 = vmatprep.subr.mxu0 %v335_v2 }
  0x4a   :  { %274 = vmatpush3.xpose.msra.mxu1 %v310_v47  ;;  %232 = vmatpush3.xpose.msra.mxu0 %v310_v47 }
  0x4b   :  { %259 = vmatprep.subr.mxu1 %v335_v2  ;;  %233 = vmatprep.subr.mxu0 %v335_v2 }
  0x4e   :  { %275 = vmatpush3.xpose.msra.mxu1 %v312_v48  ;;  %234 = vmatpush3.xpose.msra.mxu0 %v312_v48 }
  0x51   :  { %239 = vmatmul.mubr.f32.vlgmr.msra.gmra.mxu1 %v71_v49  ;;  %236 = vmatmul.mubr.f32.vlgmr.msra.gmra.mxu0 %v70_v50 }
  0x52   :  { %241 = vmatprep.mubr.msk.f32.mxu1 %vm336_vm0, %v335_v2 }
  0x55   :  { %242 = vmatmul.mubr.f32.gmra.mxu1 %v72_v51 }
 0x111   :  { %v144_v52 = vpop.f32.mrf.mxu1  ;;  %v139_v53 = vpop.f32.mrf.mxu0 }
 0x112   :  { %166 = vst [vmem:[#allocation3 + $0x8] sm:$0xff] %v144_v52  ;;  %165 = vst [vmem:[#allocation3] sm:$0xff] %v139_v53 }
 0x113   :  { %v240_v54 = vpop.f32.mrf.mxu1  ;;  %v237_v55 = vpop.f32.mrf.mxu0 }
 0x115   :  { %v149_v56 = vpop.f32.mrf.mxu1 }
 0x116   :  { %167 = vst [vmem:[#allocation3 + $0x10] sm:$0xff] %v149_v56 }
 0x117   :  { %v243_v57 = vpop.f32.mrf.mxu1 }
 0x118   :  { %324 = shalt.err (!%p321_p4)
}
 0x119   :  { %s338_s0 = smov 128   ;;  %s339_s21 = smov 8  }
 0x11a   :  { %179 = dma.vmem_to_hbm [thread:$0]  %s174_s19, 384, %s455_s2, [#allocation4], %s338_s0, %s338_s0, %s339_s21  }
 0x11b   :  { %333 = dma.done.wait [#allocation4], 384  }
 0x11c   :  { %334 = vsyncadd [#allocation4], 4294966912 }
 0x11d   :  { %183 = vsyncpa [#allocation4], 1 }

</bundles_post_ra>
